<compile_context>
chip_gen: v6e
topology: v6e:2x2x1
jax: 0.10.0
libtpu: 0.0.40
codegen_flags: <defaults>
</compile_context>

<pallas_src>
import jax
import jax.numpy as jnp
from jax.experimental import pallas as pl
from jax.experimental.pallas import tpu as pltpu

_NBLK_TARGET = 4096   # ~0.75 MiB of xyz per block at B=16, C=3 (f32)
_PALLAS_MIN_N = 64    # below this, XLA's fused softmax/reduce wins


def _locality_loss_kernel(params_ref, goal_ref, xyz_ref, scores_ref, out_ref):
    # params_ref: (2,)          SMEM  [wt, spread]
    # goal_ref:   (C, 1, NBLK)  VMEM
    # xyz_ref:    (C, B, NBLK)  VMEM  (points on sublanes, instances on lanes)
    # scores_ref: (B, NBLK)     VMEM
    # out_ref:    (1, NBLK)     VMEM  (lane-dense per-instance losses)
    s = scores_ref[...]                               # (B, NBLK)
    m = jnp.max(s, axis=0, keepdims=True)             # (1, NBLK) sublane reduce
    e = jnp.exp(s - m)                                # (B, NBLK) EUP

    # Squared distance of each point to the goal; tiny static C axis unrolled
    # on the VPU (no cross-lane work needed in this layout).
    c_dim = xyz_ref.shape[0]
    d = None
    for c in range(c_dim):
        diff = xyz_ref[c] - goal_ref[c]               # (B, NBLK) - (1, NBLK)
        sq = diff * diff
        d = sq if d is None else d + sq               # (B, NBLK)

    num = jnp.sum(d * e, axis=0, keepdims=True)       # (1, NBLK)
    den = jnp.sum(e, axis=0, keepdims=True)           # (1, NBLK)

    wt = params_ref[0]
    spread = params_ref[1]
    # Folds the softmax normalization and the mean-over-B into one scale.
    scale = wt / (spread * jnp.float32(scores_ref.shape[0]))
    out_ref[...] = (scale * num) * pl.reciprocal(den, approx=False)


def _pick_block(n, target=_NBLK_TARGET):
    """Instance-block size (lane-aligned) and padded N; >=2 grid steps once n>128."""
    if n <= 128:
        return n, n                       # single full-extent block, no padding
    n_steps = max(2, -(-n // target))     # at least 2 steps for v7x's 2 TCs
    nblk = min(target, ((-(-n // n_steps) + 127) // 128) * 128)
    npad = -(-n // nblk) * nblk
    return nblk, npad


def supervised_locality_loss_batched_cbn(goal_c1n, xyz_cbn, scores_bn,
                                         wt=1.0, spread=0.5):
    """Kernel-native layout: goal (C,1,N), xyz (C,B,N), scores (B,N) -> (N,)."""
    C, B, N = xyz_cbn.shape
    nblk, npad = _pick_block(N)
    if npad != N:
        pad = npad - N
        # Zero-padded tail instances are finite (den=B>0) and sliced off below.
        goal_c1n = jnp.pad(goal_c1n, ((0, 0), (0, 0), (0, pad)))
        xyz_cbn = jnp.pad(xyz_cbn, ((0, 0), (0, 0), (0, pad)))
        scores_bn = jnp.pad(scores_bn, ((0, 0), (0, pad)))

    params = jnp.stack([jnp.asarray(wt, jnp.float32),
                        jnp.asarray(spread, jnp.float32)])        # (2,) SMEM

    out = pl.pallas_call(
        _locality_loss_kernel,
        out_shape=jax.ShapeDtypeStruct((1, npad), jnp.float32),
        grid=(npad // nblk,),
        in_specs=[
            pl.BlockSpec(memory_space=pltpu.MemorySpace.SMEM),     # [wt, spread]
            pl.BlockSpec((C, 1, nblk), lambda i: (0, 0, i)),       # goal
            pl.BlockSpec((C, B, nblk), lambda i: (0, 0, i)),       # xyz
            pl.BlockSpec((B, nblk), lambda i: (0, i)),             # scores
        ],
        out_specs=pl.BlockSpec((1, nblk), lambda i: (0, i)),       # lane-dense
        compiler_params=pltpu.CompilerParams(
            dimension_semantics=("parallel",)),                    # shard over TCs
    )(params, goal_c1n, xyz_cbn, scores_bn)
    return out[0, :N]


def _locality_loss_jnp(goal_pts, xyzs, scores, wt, spread):
    """Fused-XLA fallback for tiny N (launch overhead would dominate)."""
    p = jax.nn.softmax(scores.astype(jnp.float32), axis=-1)                   # (N,B)
    diff = xyzs.astype(jnp.float32) - goal_pts.astype(jnp.float32)[:, None, :]
    d = jnp.sum(diff * diff, axis=-1)                                         # (N,B)
    return wt * jnp.mean(d * p / spread, axis=-1)


def supervised_locality_loss_batched(goal_pts, xyzs, scores, wt=1.0, spread=0.5,
                                     force_pallas=False):
    """goal_pts (N,C), xyzs (N,B,C), scores (N,B) -> (N,) losses."""
    N, B, C = xyzs.shape
    if N < _PALLAS_MIN_N and not force_pallas:
        return _locality_loss_jnp(goal_pts, xyzs, scores, wt, spread)
    goal_c1n = jnp.transpose(goal_pts.astype(jnp.float32))[:, None, :]        # (C,1,N)
    # TODO(synk): feed xyz in (C,B,N) layout from upstream (via the *_cbn entry
    # point) to avoid this one host-side transpose of the largest input.
    xyz_cbn = jnp.transpose(xyzs.astype(jnp.float32), (2, 1, 0))              # (C,B,N)
    scores_bn = jnp.transpose(scores.astype(jnp.float32))                     # (B,N)
    return supervised_locality_loss_batched_cbn(goal_c1n, xyz_cbn, scores_bn,
                                                wt=wt, spread=spread)


def supervised_locality_loss(goal_pt, xyz, scores, wt=1.0, spread=0.5):
    """Single-instance forward matching the PyTorch module signature."""
    B, C = xyz.shape
    return supervised_locality_loss_batched(
        jnp.reshape(goal_pt, (1, C)), jnp.reshape(xyz, (1, B, C)),
        jnp.reshape(scores, (1, B)), wt=wt, spread=spread)[0]


def _reference(goal_pt, xyz, scores, wt=1.0, spread=0.5):
    B, C = xyz.shape
    p = jax.nn.softmax(scores, axis=-1)
    center = jnp.broadcast_to(jnp.reshape(goal_pt, (1, C)), (B, C))
    dists = jnp.sum((xyz - center) ** 2, axis=-1)
    return wt * jnp.mean(dists * p / spread)


if __name__ == "__main__":
    key = jax.random.PRNGKey(0)
    k1, k2, k3 = jax.random.split(key, 3)

    # N loss instances, each with B points in 3-D (as implied by the module).
    N, B, C = 256, 16, 3
    xyz = jax.random.normal(k1, (N, B, C), dtype=jnp.float32)
    goal_pts = jax.random.normal(k2, (N, C), dtype=jnp.float32)
    scores = jax.random.normal(k3, (N, B), dtype=jnp.float32)

    ref = jax.block_until_ready(
        jax.vmap(lambda g, x, s: _reference(g, x, s, 1.0, 0.5))(goal_pts, xyz, scores))

    # Batched Pallas path: NBLK=128, grid=(2,), lane-dense output.
    losses = jax.block_until_ready(
        supervised_locality_loss_batched(goal_pts, xyz, scores, wt=1.0, spread=0.5))
    assert losses.shape == (N,)
    assert jnp.allclose(losses, ref, rtol=1e-5, atol=1e-6), (losses, ref)

    # Tiny-N forced-Pallas path (single full-extent block, no padding).
    Ns = 8
    losses_s = jax.block_until_ready(
        supervised_locality_loss_batched(goal_pts[:Ns], xyz[:Ns], scores[:Ns],
                                         wt=1.0, spread=0.5, force_pallas=True))
    assert jnp.allclose(losses_s, ref[:Ns], rtol=1e-5, atol=1e-6), (losses_s, ref[:Ns])

    # Single-instance wrapper (module signature) -> jnp fallback at N=1.
    loss0 = jax.block_until_ready(
        supervised_locality_loss(goal_pts[0], xyz[0], scores[0], wt=1.0, spread=0.5))
    assert jnp.allclose(loss0, ref[0], rtol=1e-5, atol=1e-6), (loss0, ref[0])

    print("KERNEL_OK")
</pallas_src>

<mosaic_0001>
module attributes {stable_mosaic.version = 11 : i64} {
  func.func @_locality_loss_kernel(%arg0: i32, %arg1: memref<2xf32, #tpu.memory_space<smem>>, %arg2: memref<3x1x128xf32, #tpu.memory_space<vmem>>, %arg3: memref<3x16x128xf32, #tpu.memory_space<vmem>>, %arg4: memref<16x128xf32, #tpu.memory_space<vmem>>, %arg5: memref<1x128xf32, #tpu.memory_space<vmem>>) attributes {dimension_semantics = [#tpu.dimension_semantics<parallel>], iteration_bounds = array<i64: 2>, scalar_prefetch = 0 : i64, scratch_operands = 0 : i64, tpu.core_type = #tpu.core_type<tc>, window_params = [{transform_indices = @transform_0, window_bounds = array<i64: 2>}, {transform_indices = @transform_1, window_bounds = array<i64: 3, 1, 128>}, {transform_indices = @transform_2, window_bounds = array<i64: 3, 16, 128>}, {transform_indices = @transform_3, window_bounds = array<i64: 16, 128>}, {transform_indices = @transform_4, window_bounds = array<i64: 1, 128>}]} {
    %c0 = arith.constant 0 : index
    %c0_0 = arith.constant 0 : index
    %0 = vector.load %arg4[%c0, %c0_0] : memref<16x128xf32, #tpu.memory_space<vmem>>, vector<16x128xf32>
    %cst = arith.constant dense<0xFF800000> : vector<128xf32>
    %1 = vector.multi_reduction <maximumf>, %0, %cst [0] : vector<16x128xf32> to vector<128xf32>
    %2 = vector.shape_cast %1 : vector<128xf32> to vector<1x128xf32>
    %3 = vector.broadcast %2 : vector<1x128xf32> to vector<16x128xf32>
    %4 = arith.subf %0, %3 : vector<16x128xf32>
    %5 = math.exp %4 : vector<16x128xf32>
    %c0_1 = arith.constant 0 : index
    %c0_2 = arith.constant 0 : index
    %c0_3 = arith.constant 0 : index
    %6 = vector.load %arg3[%c0_1, %c0_2, %c0_3] : memref<3x16x128xf32, #tpu.memory_space<vmem>>, vector<1x16x128xf32>
    %7 = vector.shape_cast %6 : vector<1x16x128xf32> to vector<16x128xf32>
    %c0_4 = arith.constant 0 : index
    %c0_5 = arith.constant 0 : index
    %c0_6 = arith.constant 0 : index
    %8 = vector.load %arg2[%c0_4, %c0_5, %c0_6] : memref<3x1x128xf32, #tpu.memory_space<vmem>>, vector<1x1x128xf32>
    %9 = vector.shape_cast %8 : vector<1x1x128xf32> to vector<1x128xf32>
    %10 = vector.broadcast %9 : vector<1x128xf32> to vector<16x128xf32>
    %11 = arith.subf %7, %10 : vector<16x128xf32>
    %12 = arith.mulf %11, %11 : vector<16x128xf32>
    %c1 = arith.constant 1 : index
    %c0_7 = arith.constant 0 : index
    %c0_8 = arith.constant 0 : index
    %13 = vector.load %arg3[%c1, %c0_7, %c0_8] : memref<3x16x128xf32, #tpu.memory_space<vmem>>, vector<1x16x128xf32>
    %14 = vector.shape_cast %13 : vector<1x16x128xf32> to vector<16x128xf32>
    %c1_9 = arith.constant 1 : index
    %c0_10 = arith.constant 0 : index
    %c0_11 = arith.constant 0 : index
    %15 = vector.load %arg2[%c1_9, %c0_10, %c0_11] : memref<3x1x128xf32, #tpu.memory_space<vmem>>, vector<1x1x128xf32>
    %16 = vector.shape_cast %15 : vector<1x1x128xf32> to vector<1x128xf32>
    %17 = vector.broadcast %16 : vector<1x128xf32> to vector<16x128xf32>
    %18 = arith.subf %14, %17 : vector<16x128xf32>
    %19 = arith.mulf %18, %18 : vector<16x128xf32>
    %20 = arith.addf %12, %19 : vector<16x128xf32>
    %c2 = arith.constant 2 : index
    %c0_12 = arith.constant 0 : index
    %c0_13 = arith.constant 0 : index
    %21 = vector.load %arg3[%c2, %c0_12, %c0_13] : memref<3x16x128xf32, #tpu.memory_space<vmem>>, vector<1x16x128xf32>
    %22 = vector.shape_cast %21 : vector<1x16x128xf32> to vector<16x128xf32>
    %c2_14 = arith.constant 2 : index
    %c0_15 = arith.constant 0 : index
    %c0_16 = arith.constant 0 : index
    %23 = vector.load %arg2[%c2_14, %c0_15, %c0_16] : memref<3x1x128xf32, #tpu.memory_space<vmem>>, vector<1x1x128xf32>
    %24 = vector.shape_cast %23 : vector<1x1x128xf32> to vector<1x128xf32>
    %25 = vector.broadcast %24 : vector<1x128xf32> to vector<16x128xf32>
    %26 = arith.subf %22, %25 : vector<16x128xf32>
    %27 = arith.mulf %26, %26 : vector<16x128xf32>
    %28 = arith.addf %20, %27 : vector<16x128xf32>
    %29 = arith.mulf %28, %5 : vector<16x128xf32>
    %cst_17 = arith.constant dense<0.000000e+00> : vector<128xf32>
    %30 = vector.multi_reduction <add>, %29, %cst_17 [0] : vector<16x128xf32> to vector<128xf32>
    %31 = vector.shape_cast %30 : vector<128xf32> to vector<1x128xf32>
    %cst_18 = arith.constant dense<0.000000e+00> : vector<128xf32>
    %32 = vector.multi_reduction <add>, %5, %cst_18 [0] : vector<16x128xf32> to vector<128xf32>
    %33 = vector.shape_cast %32 : vector<128xf32> to vector<1x128xf32>
    %c0_19 = arith.constant 0 : index
    %34 = memref.load %arg1[%c0_19] : memref<2xf32, #tpu.memory_space<smem>>
    %c1_20 = arith.constant 1 : index
    %35 = memref.load %arg1[%c1_20] : memref<2xf32, #tpu.memory_space<smem>>
    %cst_21 = arith.constant 1.600000e+01 : f32
    %36 = arith.mulf %35, %cst_21 : f32
    %37 = arith.divf %34, %36 : f32
    %38 = vector.broadcast %37 : f32 to vector<1x128xf32>
    %39 = arith.mulf %38, %31 : vector<1x128xf32>
    %40 = tpu.reciprocal %33 : vector<1x128xf32> -> vector<1x128xf32>
    %41 = arith.mulf %39, %40 : vector<1x128xf32>
    %c0_22 = arith.constant 0 : index
    %c0_23 = arith.constant 0 : index
    %42 = vector.load %arg5[%c0_22, %c0_23] : memref<1x128xf32, #tpu.memory_space<vmem>>, vector<1x128xf32>
    tpu.vector_store %arg5[%c0_22, %c0_23], %41 {strides = array<i32>} : memref<1x128xf32, #tpu.memory_space<vmem>>, vector<1x128xf32>,
    return
  }
  func.func @transform_0(%arg0: i32) -> i32 {
    %c0_i32 = arith.constant 0 : i32
    %c0_i32_0 = arith.constant 0 : i32
    return %c0_i32 : i32
  }
  func.func @transform_1(%arg0: i32) -> (i32, i32, i32) {
    %c0_i32 = arith.constant 0 : i32
    %c0_i32_0 = arith.constant 0 : i32
    %c0_i32_1 = arith.constant 0 : i32
    return %c0_i32, %c0_i32_0, %arg0 : i32, i32, i32
  }
  func.func @transform_2(%arg0: i32) -> (i32, i32, i32) {
    %c0_i32 = arith.constant 0 : i32
    %c0_i32_0 = arith.constant 0 : i32
    %c0_i32_1 = arith.constant 0 : i32
    return %c0_i32, %c0_i32_0, %arg0 : i32, i32, i32
  }
  func.func @transform_3(%arg0: i32) -> (i32, i32) {
    %c0_i32 = arith.constant 0 : i32
    %c0_i32_0 = arith.constant 0 : i32
    return %c0_i32, %arg0 : i32, i32
  }
  func.func @transform_4(%arg0: i32) -> (i32, i32) {
    %c0_i32 = arith.constant 0 : i32
    %c0_i32_0 = arith.constant 0 : i32
    return %c0_i32, %arg0 : i32, i32
  }
}

</mosaic_0001>

<bundles_post_ra>
// kernel: tpu_custom_call.1
= control target key start
LH: loop header
LB: loop body
LE: loop exit
PB: predicated region body
PF: predicated region fallthrough
CT: control target
= control target key end

     0   :  { %s1100_s0 = inlined_call_operand.hbm [shape: f32[2], index: 0, kind: input, shape index: {}]   ;;  %s1101_s1 = inlined_call_operand.hbm [shape: f32[3,1,256], index: 1, kind: input, shape index: {}]   ;;  %s1102_s2 = inlined_call_operand.hbm [shape: f32[3,16,256], index: 2, kind: input, shape index: {}]   ;;  %s1103_s3 = inlined_call_operand.hbm [shape: f32[16,256], index: 3, kind: input, shape index: {}]   ;;  %s1104_s4 = inlined_call_operand.hbm [shape: f32[1,256], index: 4, kind: output, shape index: {}]  }
   0x1   :  { %1114 = sst [smem:[#allocation16_spill]] %s1100_s0 }
   0x2   :  { %1115 = sst [smem:[#allocation17_spill]] %s1101_s1 }
   0x3   :  { %1116 = sst [smem:[#allocation18_spill]] %s1102_s2 }
   0x4   :  { %9 = vsyncpa [#allocation5], 0 }
   0x5   :  { %10 = vsyncpa [#allocation3], 0 }
   0x6   :  { %12 = vsyncpa [#allocation3 + $0x1], 0 }
   0x7   :  { %13 = vsyncpa [#allocation8], 0 }
   0x8   :  { %15 = vsyncpa [#allocation8 + $0x1], 0 }
   0x9   :  { %16 = vsyncpa [#allocation4], 0 }
   0xa   :  { %18 = vsyncpa [#allocation4 + $0x1], 0  ;;  %s841_s15 = smov 0   ;;  %s843_s16 = smov 0  }
   0xb   :  { %s845_s17 = smov 0   ;;  %s847_s18 = smov 0  }
   0xc LB: > { %s862_s19 = sadd.s32 1, %s803_s18   ;;  %s52_s20 = sadd.s32 1, %s799_s17  ;;  %s803_s18 = sphi %s847_s18, %s1143_s18   ;;  %s799_s17 = sphi %s845_s17, %s1142_s17   ;;  %s795_s16 = sphi %s843_s16, %s1141_s16   ;;  %s791_s15 = sphi %s841_s15, %s1140_s15  }
   0xd   : > { %s49_s21 = ssub.s32 %s803_s18, %s862_s19  ;;  %p1105_p0 = scmp.ne.s32.totalorder %s799_s17, %s795_s16 }
   0xe   : > { %p50_p1 = scmp.eq.s32.totalorder %s49_s21, 0  ;;  %p60_p2 = scmp.eq.s32.totalorder %s803_s18, 0 }
   0xf   : > { %p586_p4 = scmp.lt.s32.totalorder %s803_s18, 2  ;;  %s879_s23 = sand.u32 1, %s799_s17  }
  0x10   : > { %s873_s22 = scalar_select %p50_p1, %s799_s17, %s52_s20  }
  0x11   : > { %p61_p5 = por %p60_p2, %p1105_p0  ;;  %s196_s24 = sand.u32 1, %s803_s18  }
  0x12   : > { %1117 = sst [smem:[#allocation15_spill]] %s873_s22  ;;  %s550_s25 = smul.u32 48, %s879_s23 }
  0x13   : > { %p883_p6 = pnand %p586_p4, %p61_p5  ;;  %s1109_s27 = sshll.u32 %s803_s18, 7 }
  0x14   : > { %s1119_s2 = sld [smem:[#allocation18_spill]]  ;;  %s200_s5 = scalar_lea.vmem [#allocation7], %s550_s25 }
  0x15   : > { %s206_s6 = sshll.u32 %s200_s5, 4  ;;  %s897_s7 = scalar_lea.sflag [#allocation8], %s196_s24  ;;  %s895_s6 = int_to_ptr.vmem [resolvable:$true] %s206_s6 }
  0x16   : > { %p903_p8 = pneg %p883_p6 }
  0x1a   : > { %s893_s30 = scalar_lea.hbm %s1119_s2, %s1109_s27  ;;  %s641_s12 = scalar_lea.hbm %s1119_s2, 1536 }
  0x1b   : > { %s636_s8 = scalar_lea.hbm %s893_s30, 768  ;;  %p642_p11 = scmp.lt.s32.totalorder %s893_s30, %s1119_s2 }
  0x1c   : > { %p637_p7 = scmp.ne.s32.totalorder %s893_s30, %s636_s8  ;;  %p643_p12 = scmp.lt.s32.totalorder %s641_s12, %s636_s8 }
  0x1e   : > { %p639_p9 = pnand %p903_p8, %p637_p7  ;;  %p644_p13 = por %p643_p12, %p642_p11 }
  0x20   : > { %p640_p10 = pneg %p639_p9 }
  0x22   : > { %p645_p1 = pnand %p644_p13, %p640_p10 }
  0x24   : > { %648 = shalt.err (!%p645_p1)
}
  0x25   : > { %s649_s20 = scalar_lea.vmem %s895_s6, 768  ;;  %s805_s21 = smov [#allocation7]  }
  0x26   : > { %p650_p2 = scmp.ne.s32.totalorder %s895_s6, %s649_s20  ;;  %s654_s24 = sshll.u32 %s805_s21, 4  ;;  %s655_s24 = int_to_ptr.vmem [resolvable:$false] %s654_s24 }
  0x27   : > { %s656_s25 = scalar_lea.vmem %s655_s24, 1536  ;;  %p657_p7 = scmp.lt.s32.totalorder %s895_s6, %s655_s24 }
  0x28   : > { %p652_p4 = pnand %p650_p2, %p903_p8  ;;  %p658_p9 = scmp.lt.s32.totalorder %s656_s25, %s649_s20 }
  0x2a   : > { %p653_p5 = pneg %p652_p4  ;;  %p659_p3 = por %p658_p9, %p657_p7 }
  0x2c   : > { %p660_p0 = pnand %p659_p3, %p653_p5 }
  0x2e   : > { %663 = shalt.err (!%p660_p0)
}
  0x2f   : > { %s1106_s28 = smov 256   ;;  %s1107_s29 = smov 128  }
  0x30   : > { %s1108_s5 = smov 8   ;;  %s930_s8 = sadd.s32 4294967295, %s803_s18  }
  0x31   : > { %577 = dma.hbm_to_vmem [thread:$0]  (!%p883_p6), %s893_s30, 768, %s895_s6, %s897_s7, %s1106_s28, %s1107_s29, %s1108_s5  }
  0x32   : > { %s525_s10 = sadd.s32 4294967294, %s803_s18   ;;  %p65_p0 = scmp.ne.s32.totalorder %s795_s16, %s791_s15 }
  0x33   : > { %p1110_p3 = scmp.eq.s32.totalorder %s930_s8, 0  ;;  %p141_p10 = scmp.eq.s32.totalorder %s930_s8, 1 }
  0x34   : > { %p147_p11 = scmp.eq.s32.totalorder %s525_s10, 1  ;;  %p526_p13 = scmp.ge.s32.totalorder %s803_s18, 1 }
  0x35   : > { %p939_p12 = por %p1110_p3, %p65_p0  ;;  %p1122_p1 = scmp.ne.s32.totalorder %s799_s17, %s795_s16 }
  0x36   : > { %p951_p4 = por %p147_p11, %p65_p0  ;;  %p154_p5 = scmp.lt.s32.totalorder %s803_s18, 3 }
  0x37   : > { %s1121_s11 = scalar_select %p939_p12, 1, 0 }
  0x38   : > { %p947_p2 = por %p141_p10, %p1122_p1  ;;  %p956_p7 = pnand %p526_p13, %p154_p5 }
  0x39   : > { %s1124_s6 = scalar_select %p951_p4, 1, 0 }
  0x3a   : > { %s1123_s30 = scalar_select %p947_p2, 1, 0 }
  0x3b   : > { %s1125_s12 = scalar_select %p956_p7, 1, 0 }
  0x3c   : > { %s549_s13 = smul.u32 3, %s879_s23  ;;  %s529_s14 = sshll.u32 %s803_s18, 4 }
  0x3d   : > { %p567_p9 = pneg %p956_p7  ;;  %s1126_s1 = sld [smem:[#allocation17_spill]] }
  0x3e   : > { %s180_s25 = scalar_lea.vmem [#allocation6], %s549_s13  ;;  %s531_s28 = sshll.u32 %s879_s23, 4 }
  0x3f   : > { %s186_s10 = sshll.u32 %s180_s25, 4  ;;  %p568_p0 = pnand %p567_p9, %p1110_p3  ;;  %s971_s10 = int_to_ptr.vmem [resolvable:$true] %s186_s10 }
  0x40   : > { %s809_s29 = smov [#allocation2]   ;;  %s1127_s0 = sld [smem:[#allocation16_spill]] }
  0x41   : > { %s177_s2 = scalar_lea.sflag [#allocation3], %s879_s23 }
  0x43   : > { %s967_s24 = scalar_lea.hbm %s1126_s1, %s529_s14  ;;  %s680_s13 = scalar_lea.hbm %s1126_s1, 96 }
  0x44   : > { %s675_s22 = scalar_lea.hbm %s967_s24, 48  ;;  %p681_p1 = scmp.lt.s32.totalorder %s967_s24, %s1126_s1 }
  0x45   : > { %p676_p10 = scmp.ne.s32.totalorder %s967_s24, %s675_s22  ;;  %p682_p5 = scmp.lt.s32.totalorder %s680_s13, %s675_s22 }
  0x46   : > { %570 = dma.hbm_to_smem (!%p568_p0), %s1127_s0, 16, %s809_s29, [#allocation5]  }
  0x47   : > { %p678_p11 = pnand %p676_p10, %p903_p8  ;;  %p683_p9 = por %p682_p5, %p681_p1 }
  0x49   : > { %p679_p13 = pneg %p678_p11 }
  0x4b   : > { %p684_p3 = pnand %p683_p9, %p679_p13 }
  0x4d   : > { %687 = shalt.err (!%p684_p3)
}
  0x4e   : > { %s688_s27 = scalar_lea.vmem %s971_s10, 48  ;;  %s810_s29 = smov [#allocation6]  }
  0x4f   : > { %p689_p0 = scmp.ne.s32.totalorder %s971_s10, %s688_s27  ;;  %s693_s5 = sshll.u32 %s810_s29, 4  ;;  %s694_s5 = int_to_ptr.vmem [resolvable:$false] %s693_s5 }
  0x50   : > { %s695_s14 = scalar_lea.vmem %s694_s5, 96  ;;  %p696_p4 = scmp.lt.s32.totalorder %s971_s10, %s694_s5 }
  0x51   : > { %p691_p10 = pnand %p689_p0, %p903_p8  ;;  %p697_p2 = scmp.lt.s32.totalorder %s695_s14, %s688_s27 }
  0x53   : > { %p692_p11 = pneg %p691_p10  ;;  %p698_p12 = por %p697_p2, %p696_p4 }
  0x55   : > { %p699_p7 = pnand %p698_p12, %p692_p11 }
  0x57   : > { %702 = shalt.err (!%p699_p7)
}
  0x58   : > { %s811_s22 = smov 32   ;;  %s812_s20 = smov 16  }
  0x59   : > { %s813_s13 = smov 1   ;;  %s1128_s21 = sshll.u32 %s803_s18, 7 }
  0x5a   : > { %574 = dma.hbm_to_vmem [thread:$0]  (!%p883_p6), %s967_s24, 48, %s971_s10, %s177_s2, %s811_s22, %s812_s20, %s813_s13  }
  0x5b   : > { %s1005_s27 = scalar_lea.hbm %s1103_s3, %s1128_s21  ;;  %s220_s5 = scalar_lea.vmem [#allocation9], %s531_s28 }
  0x5c   : > { %s226_s14 = sshll.u32 %s220_s5, 4  ;;  %s703_s0 = scalar_lea.hbm %s1005_s27, 256  ;;  %s227_s14 = int_to_ptr.vmem [resolvable:$true] %s226_s14 }
  0x5d   : > { %p704_p3 = scmp.ne.s32.totalorder %s1005_s27, %s703_s0  ;;  %s708_s24 = scalar_lea.hbm %s1103_s3, 512 }
  0x5e   : > { %p709_p4 = scmp.lt.s32.totalorder %s1005_s27, %s1103_s3  ;;  %p710_p7 = scmp.lt.s32.totalorder %s708_s24, %s703_s0 }
  0x5f   : > { %p706_p12 = pnand %p704_p3, %p903_p8 }
  0x60   : > { %p711_p13 = por %p710_p7, %p709_p4 }
  0x61   : > { %p707_p2 = pneg %p706_p12 }
  0x63   : > { %p712_p1 = pnand %p711_p13, %p707_p2 }
  0x65   : > { %715 = shalt.err (!%p712_p1)
}
  0x66   : > { %s716_s23 = scalar_lea.vmem %s227_s14, 256  ;;  %s814_s28 = smov [#allocation9]  }
  0x67   : > { %p717_p5 = scmp.ne.s32.totalorder %s227_s14, %s716_s23  ;;  %s721_s20 = sshll.u32 %s814_s28, 4  ;;  %s722_s20 = int_to_ptr.vmem [resolvable:$false] %s721_s20 }
  0x68   : > { %s723_s13 = scalar_lea.vmem %s722_s20, 512  ;;  %p724_p10 = scmp.lt.s32.totalorder %s227_s14, %s722_s20 }
  0x69   : > { %p719_p9 = pnand %p717_p5, %p903_p8  ;;  %p725_p11 = scmp.lt.s32.totalorder %s723_s13, %s716_s23 }
  0x6b   : > { %p720_p0 = pneg %p719_p9  ;;  %p726_p3 = por %p725_p11, %p724_p10 }
  0x6d   : > { %p727_p12 = pnand %p726_p3, %p720_p0 }
  0x6f   : > { %730 = shalt.err (!%p727_p12)
}
  0x70   : > { %s1129_s0 = smov 8   ;;  %s1130_s1 = smov 128  }
  0x71   : > { %s1131_s21 = smov 256   ;;  %p1132_p8 = scmp.ne.s32.totalorder %s1125_s12, 0 }
  0x72   : > { %580 = dma.hbm_to_vmem [thread:$0]  (!%p883_p6), %s1005_s27, 256, %s227_s14, %s897_s7, %s1131_s21, %s1130_s1, %s1129_s0  }
  0x73   : > { %238 = sbr.rel (%p1132_p8) target bundleno = 226 (0xe2), region = 36  ;;  %p1133_p2 = scmp.eq.s32.totalorder (!%p1132_p8), %s930_s8, 0 }
  0x78   : > { %774 = dma.done.wait (%p1133_p2), [#allocation5], 16   ;;  %p1134_p4 = pmov %p1133_p2 }
  0x79   : > { %s1036_s9 = sand.u32 1, %s795_s16   ;;  %p1135_p6 = scmp.ne.s32.totalorder %s1121_s11, 0 }
  0x7a   : > { %776 = vsyncadd (%p1134_p4), [#allocation5], 4294967280  ;;  %s551_s26 = smul.u32 3, %s1036_s9  ;;  %s245_s25 = scalar_lea.sflag [#allocation3], %s1036_s9 }
  0x7c   : > { %s1040_s29 = scalar_lea.vmem [#allocation6], %s551_s26 }
  0x7d   : > { %778 = dma.done.wait (%p1135_p6), %s245_s25, 48  }
  0x7e   : > { %780 = vsyncadd (%p1135_p6), %s245_s25, 4294967248  ;;  %s253_s7 = sand.u32 1, %s930_s8   ;;  %s552_s12 = smul.u32 48, %s1036_s9 }
  0x7f   : > { %s254_s27 = scalar_lea.sflag [#allocation8], %s253_s7 }
  0x80   : > { %s1048_s5 = scalar_lea.vmem [#allocation7], %s552_s12 }
  0x81   : > { %782 = dma.done.wait (%p1135_p6), %s254_s27, 1024  }
  0x82   : > { %784 = vsyncadd (%p1135_p6), %s254_s27, 4294966272  ;;  %s535_s14 = sshll.u32 %s1036_s9, 4 }
  0x83   : > { %s266_s2 = scalar_lea.vmem [#allocation9], %s535_s14 }
  0x84   : > { %271 = sfence }
  0x85   : > { %s545_s24 = sld [smem:[#allocation2 + $0x1]]  ;;  %v301_v0 = vld [vmem:[%s266_s2] sm:$0xff]  ;;  %v302_v1 = vld [vmem:[%s266_s2 + $0x8] sm:$0xff]  ;;  %v537_v18 = vld [vmem:[%s1048_s5 + $0x10] sm:$0xff]  ;;  %s546_s28 = sshll.u32 %s930_s8, 4 }
  0x86   : > { %v303_v2 = vmax.f32 %v301_v0, %v302_v1  ;;  %v316_v15 = vld [vmem:[%s1048_s5] sm:$0xff]  ;;  %v317_v16 = vld [vmem:[%s1048_s5 + $0x8] sm:$0xff]  ;;  %v538_v19 = vld [vmem:[%s1048_s5 + $0x18] sm:$0xff]  ;;  %s379_s11 = sld [smem:[#allocation2]]  ;;  %s300_s20 = scalar_lea.vmem [#allocation10], %s1036_s9 }
  0x87   : > { %v536_v17 = vld [vmem:[%s1040_s29] ss:$0 sm:$0xff]  ;;  %v540_v20 = vld [vmem:[%s1040_s29 + $0x1] ss:$0 sm:$0xff]  ;;  %v541_v25 = vld [vmem:[%s1048_s5 + $0x20] sm:$0xff]  ;;  %s404_s13 = sshll.u32 %s300_s20, 4  ;;  %s402_s21 = scalar_lea.hbm %s1104_s4, %s546_s28  ;;  %s405_s13 = int_to_ptr.vmem [resolvable:$true] %s404_s13 }
  0x88   : > { %v304_v3 = vrot.slane %v303_v2, 4  ;;  %v325_v21 = vsub.f32 %v316_v15, %v536_v17  ;;  %v326_v22 = vsub.f32 %v317_v16, %v536_v17  ;;  %v340_v23 = vsub.f32 %v537_v18, %v540_v20  ;;  %v542_v26 = vld [vmem:[%s1048_s5 + $0x28] sm:$0xff]  ;;  %s392_s26 = scalar_lea.sflag [#allocation4], %s1036_s9  ;;  %s731_s25 = scalar_lea.vmem %s405_s13, 16 }
  0x89   : > { %v341_v24 = vsub.f32 %v538_v19, %v540_v20  ;;  %v544_v27 = vld [vmem:[%s1040_s29 + $0x2] ss:$0 sm:$0xff]  ;;  %p732_p7 = scmp.ne.s32.totalorder %s405_s13, %s731_s25  ;;  %p1136_p13 = scmp.ne.s32.totalorder %s1123_s30, 0 }
  0x8a   : > { %v305_v4 = vmax.f32 %v303_v2, %v304_v3  ;;  %v327_v28 = vmul.f32 %v325_v21, %v325_v21  ;;  %v328_v29 = vmul.f32 %v326_v22, %v326_v22  ;;  %v342_v31 = vmul.f32 %v340_v23, %v340_v23  ;;  %s815_s29 = smov [#allocation10]  }
  0x8b   : > { %s381_s10 = smul.f32 16.0, %s545_s24  ;;  %v343_v32 = vmul.f32 %v341_v24, %v341_v24  ;;  %v357_v33 = vsub.f32 %v541_v25, %v544_v27  ;;  %v358_v34 = vsub.f32 %v542_v26, %v544_v27  ;;  %p733_p1 = pnand %p732_p7, %p1136_p13 }
  0x8c   : > { %v306_v5 = vrot.slane %v305_v4, 2  ;;  %v344_v37 = vadd.f32 %v342_v31, %v327_v28  ;;  %s735_s7 = sshll.u32 %s815_s29, 4  ;;  %s736_s7 = int_to_ptr.vmem [resolvable:$false] %s735_s7 }
  0x8d   : > { %v382_v6 = vstv %s381_s10  ;;  %v345_v38 = vadd.f32 %v343_v32, %v328_v29  ;;  %v359_v39 = vmul.f32 %v357_v33, %v357_v33  ;;  %v360_v40 = vmul.f32 %v358_v34, %v358_v34  ;;  %p734_p5 = pneg %p733_p1  ;;  %s737_s8 = scalar_lea.vmem %s736_s7, 32 }
  0x8e   : > { %628 = vrcp.f32 %v382_v6  ;;  %v307_v7 = vmax.f32 %v305_v4, %v306_v5  ;;  %p738_p9 = scmp.lt.s32.totalorder %s405_s13, %s736_s7  ;;  %p739_p0 = scmp.lt.s32.totalorder %s737_s8, %s731_s25 }
  0x8f   : > { %v361_v42 = vadd.f32 %v359_v39, %v344_v37  ;;  %v362_v43 = vadd.f32 %v360_v40, %v345_v38 }
  0x90   : > { %v308_v8 = vrot.slane %v307_v7, 1  ;;  %p740_p10 = por %p739_p0, %p738_p9 }
  0x92   : > { %v309_v9 = vmax.f32 %v307_v7, %v308_v8  ;;  %p741_p11 = pnand %p740_p10, %p734_p5 }
  0x94   : > { %v310_v10 = vsub.f32 %v301_v0, %v309_v9  ;;  %v311_v11 = vsub.f32 %v302_v1, %v309_v9 }
  0x96   : > { %v312_v12 = vmul.f32 1.442695, %v310_v10  ;;  %v314_v13 = vmul.f32 1.442695, %v311_v11 }
  0x98   : > { %630 = vpow2.f32 %v312_v12 }
  0x99   : > { %632 = vpow2.f32 %v314_v13 }
  0x9b   : > { %v629_v14 = vpop.eup %628 }
  0x9c   : > { %553 = vpush %v629_v14 }
  0xa5   : > { %v631_v30 = vpop.eup %630 }
  0xa6   : > { %v633_v35 = vpop.eup %632  ;;  %v363_v45 = vmul.f32 %v631_v30, %v361_v42 }
  0xa7   : > { %v372_v36 = vadd.f32 %v633_v35, %v631_v30  ;;  %v364_v46 = vmul.f32 %v633_v35, %v362_v43 }
  0xa9   : > { %v373_v41 = vrot.slane %v372_v36, 4  ;;  %v365_v48 = vadd.f32 %v364_v46, %v363_v45 }
  0xab   : > { %v374_v44 = vadd.f32 %v373_v41, %v372_v36  ;;  %v366_v50 = vrot.slane %v365_v48, 4 }
  0xad   : > { %v375_v47 = vrot.slane %v374_v44, 2  ;;  %v367_v52 = vadd.f32 %v366_v50, %v365_v48 }
  0xaf   : > { %v376_v49 = vadd.f32 %v375_v47, %v374_v44  ;;  %v368_v54 = vrot.slane %v367_v52, 2 }
  0xb1   : > { %v377_v51 = vrot.slane %v376_v49, 1  ;;  %v369_v55 = vadd.f32 %v368_v54, %v367_v52 }
  0xb3   : > { %v378_v53 = vadd.f32 %v377_v51, %v376_v49  ;;  %v370_v56 = vrot.slane %v369_v55, 1 }
  0xb5   : > { %634 = vrcp.f32 %v378_v53  ;;  %v371_v57 = vadd.f32 %v370_v56, %v369_v55 }
  0xc2   : > { %v635_v58 = vpop.eup %634 }
  0xcd   : > { %s554_s22 = spop %553 }
  0xce   : > { %s385_s23 = smul.f32 %s554_s22, %s379_s11 }
  0xd0   : > { %v386_v59 = vstv %s385_s23 }
  0xd1   : > { %v387_v60 = vmul.f32 %v386_v59, %v371_v57 }
  0xd3   : > { %v389_v61 = vmul.f32 %v635_v58, %v387_v60 }
  0xd5   : > { %390 = vst [vmem:[%s300_s20] sm:$0x1] %v389_v61 }
  0xd6   : > { %744 = shalt.err (!%p741_p11)
}
  0xd7   : > { %s745_s12 = scalar_lea.hbm %s402_s21, 16  ;;  %s749_s5 = scalar_lea.hbm %s1104_s4, 32 }
  0xd8   : > { %p746_p3 = scmp.ne.s32.totalorder %s402_s21, %s745_s12  ;;  %p750_p2 = scmp.lt.s32.totalorder %s402_s21, %s1104_s4 }
  0xd9   : > { %p751_p4 = scmp.lt.s32.totalorder %s749_s5, %s745_s12 }
  0xda   : > { %p747_p12 = pnand %p746_p3, %p1136_p13 }
  0xdb   : > { %p752_p6 = por %p751_p4, %p750_p2 }
  0xdc   : > { %p748_p8 = pneg %p747_p12 }
  0xde   : > { %p753_p7 = pnand %p752_p6, %p748_p8 }
  0xe0   : > { %756 = shalt.err (!%p753_p7)
}
  0xe1   : > { %565 = dma.vmem_to_hbm [thread:$0]  (%p1136_p13), %s405_s13, 16, %s402_s21, %s392_s26  }
  0xe2 PF: > { %s416_s24 = sand.u32 1, %s791_s15   ;;  %p1137_p1 = scmp.ne.s32.totalorder %s1124_s6, 0 }
  0xe3   : > { %p1138_p5 = scmp.ge.s32.totalorder %s803_s18, 2  ;;  %s417_s10 = scalar_lea.sflag [#allocation4], %s416_s24 }
  0xe5   : > { %p582_p9 = pnand %p1138_p5, %p1137_p1 }
  0xe7   : > { %p583_p0 = pneg %p582_p9 }
  0xe9   : > { %786 = dma.done.wait (%p583_p0), %s417_s10, 16  }
  0xea   : > { %788 = vsyncadd (%p583_p0), %s417_s10, 4294967280  ;;  %s1139_s11 = sld [smem:[#allocation15_spill]]  ;;  %p21_p10 = scmp.ge.s32.totalorder %s862_s19, 4  }
  0xeb   : > { %s1140_s15 = smov %s795_s16  ;;  %s1141_s16 = smov %s799_s17 }
  0xec   : > { %s1143_s18 = smov %s862_s19  ;;  %23 = sbr.rel (!%p21_p10) target bundleno = 12 (0xc), region = 114 }
  0xf0   : > { %s1142_s17 = smov %s1139_s11 }
  0xf1   :  { %421 = vsyncpa [#allocation3], 1 }
  0xf2   :  { %423 = vsyncpa [#allocation3 + $0x1], 1 }
  0xf3   :  { %424 = vsyncpa [#allocation8], 1 }
  0xf4   :  { %426 = vsyncpa [#allocation8 + $0x1], 1 }
  0xf5   :  { %427 = vsyncpa [#allocation4], 1 }
  0xf6   :  { %429 = vsyncpa [#allocation4 + $0x1], 1 }
  0xf7   :  { %430 = vsyncpa [#allocation5], 1 }
  0xf8   :  { %432 = vsyncpa [#allocation5 + $0x1], 1 }

</bundles_post_ra>
